<compile_context>
chip_gen: v7x
topology: tpu7x:2x2x1
jax: 0.10.0
libtpu: 0.0.40
codegen_flags: <defaults>
</compile_context>

<pallas_src>
import functools
import numpy as np
import jax
import jax.numpy as jnp
from jax.experimental import pallas as pl
from jax.experimental.pallas import tpu as pltpu

EPS = 1e-5
VMEM_LIMIT = 32 * 1024 * 1024


def _round_up(x, m):
    return ((x + m - 1) // m) * m


def _pick_tm(m_total, tm_max):
    """Biggest M-tile <= tm_max, but keep >=2 grid steps so v7x megacore splits."""
    if m_total >= 2 * tm_max:
        return tm_max
    return max(8, min(tm_max, _round_up(-(-m_total // 2), 8)))


# ----------------------------- Pallas kernels ------------------------------

def _mm_bias_kernel(x_ref, w_ref, b_ref, o_ref, *, relu):
    # (tm, K) @ (K, N) on the MXU in bf16, f32 accumulate, fused bias (+ReLU), bf16 store.
    y = jnp.dot(x_ref[...], w_ref[...], preferred_element_type=jnp.float32)
    y = y + b_ref[...]
    if relu:
        y = jnp.maximum(y, 0.0)
    o_ref[...] = y.astype(o_ref.dtype)


def _conv3x3_kernel(*refs, dys, tm, n_groups, has_res, relu):
    """Direct 3x3 conv over one M-tile of 'overcomplete' output rows.

    refs: dx-grouped inputs (n_groups, bf16, fully VMEM-resident, rows x 3*Cin),
          weights (3, 3*Cin, Cout) bf16 (BN scale folded), bias (1, Cout) f32,
          [residual (tm, Cout) bf16], output (tm, Cout) bf16.
    Each dy tap is one (tm, 3*Cin) @ (3*Cin, Cout) MXU dot from a sublane-aligned
    dynamic slice of the resident group input (w_oc is a multiple of 8).
    """
    grp = refs[:n_groups]
    w_ref = refs[n_groups]
    b_ref = refs[n_groups + 1]
    res_ref = refs[n_groups + 2] if has_res else None
    o_ref = refs[-1]

    m0 = pl.multiple_of(pl.program_id(0) * tm, tm)
    acc = None
    for dy, (py, off) in enumerate(dys):
        start = pl.multiple_of(m0 + off, 8)      # off is a multiple of 8 by layout
        xt = grp[py][pl.ds(start, tm), :]
        d = jnp.dot(xt, w_ref[dy], preferred_element_type=jnp.float32)
        acc = d if acc is None else acc + d

    y = acc + b_ref[...]
    if has_res:
        y = y + res_ref[...].astype(jnp.float32)
    if relu:
        y = jnp.maximum(y, 0.0)
    o_ref[...] = y.astype(o_ref.dtype)


# --------------------------- Pallas call wrappers ---------------------------

def matmul_bias(x, w, bias, relu=False, tm_max=512):
    """Y = act(x @ w + bias). M tiled, K/N whole, bf16 operands, bf16 output."""
    M, K = x.shape
    N = w.shape[1]
    tm = _pick_tm(M, tm_max)
    m_pad = _round_up(M, tm)
    xb = x.astype(jnp.bfloat16)
    if m_pad != M:
        xb = jnp.pad(xb, ((0, m_pad - M), (0, 0)))
    wb = w.astype(jnp.bfloat16)
    b = bias.reshape(1, N).astype(jnp.float32)

    out = pl.pallas_call(
        functools.partial(_mm_bias_kernel, relu=relu),
        grid=(m_pad // tm,),
        in_specs=[pl.BlockSpec((tm, K), lambda m: (m, 0)),
                  pl.BlockSpec((K, N), lambda m: (0, 0)),
                  pl.BlockSpec((1, N), lambda m: (0, 0))],
        out_specs=pl.BlockSpec((tm, N), lambda m: (m, 0)),
        out_shape=jax.ShapeDtypeStruct((m_pad, N), jnp.bfloat16),
        compiler_params=pltpu.CompilerParams(
            dimension_semantics=("parallel",), vmem_limit_bytes=VMEM_LIMIT),
        cost_estimate=pl.CostEstimate(
            flops=int(2 * m_pad * K * N), transcendentals=0,
            bytes_accessed=int(m_pad * K * 2 + K * N * 2 + m_pad * N * 2)),
    )(xb, wb, b)
    return out[:M]


def conv3x3(x, w_stack, bias, stride, relu, residual=None, tm_max=256):
    """Direct 3x3 conv (padding=1, stride in {1,2}) with fused bias/residual/ReLU.

    x: (N,H,W,Cin) bf16; w_stack: (3, 3*Cin, Cout) bf16 (BN scale folded);
    bias: (Cout,) f32; residual: (N,oh,ow,Cout) bf16 or None.
    The wrapper builds `stride` dx-grouped row-phase arrays of width 3*Cin; the
    kernel produces one output row per 'overcomplete' position (cropped after).
    """
    N, H, W, Cin = x.shape
    Cout = w_stack.shape[-1]
    s = stride
    oh = (H + 2 - 3) // s + 1
    ow = (W + 2 - 3) // s + 1
    max_di = 2 // s                          # max row offset among the 3 dy taps
    h_oc = oh + max_di
    w_oc = _round_up(ow + max_di, 8)         # 8-aligned -> dy offsets sublane-aligned
    Hp = s * h_oc
    Wp = s * (w_oc - 1) + 3

    xp = jnp.pad(x.astype(jnp.bfloat16),
                 ((0, 0), (1, Hp - H - 1), (1, Wp - W - 1), (0, 0)))
    # dx-grouped partial im2col: one array per row-phase py, channels = 3*Cin
    groups = []
    for py in range(s):
        cols = [xp[:, py::s, dx:dx + s * (w_oc - 1) + 1:s, :] for dx in range(3)]
        groups.append(jnp.concatenate(cols, axis=-1))        # (N, h_oc, w_oc, 3*Cin)

    m_total = N * h_oc * w_oc
    tm = _pick_tm(m_total, tm_max)
    m_pad = _round_up(m_total, tm)
    off_pad = max_di * w_oc
    rows_in = m_pad + off_pad
    grp_flat = [jnp.pad(g.reshape(m_total, 3 * Cin),
                        ((0, rows_in - m_total), (0, 0))) for g in groups]

    dys = tuple((dy % s, (dy // s) * w_oc) for dy in range(3))
    b = bias.reshape(1, Cout).astype(jnp.float32)

    has_res = residual is not None
    args = grp_flat + [w_stack.astype(jnp.bfloat16), b]
    in_specs = ([pl.BlockSpec((rows_in, 3 * Cin), lambda m: (0, 0))
                 for _ in range(s)] +
                [pl.BlockSpec((3, 3 * Cin, Cout), lambda m: (0, 0, 0)),
                 pl.BlockSpec((1, Cout), lambda m: (0, 0))])
    if has_res:
        r = jnp.pad(residual.astype(jnp.bfloat16),
                    ((0, 0), (0, h_oc - oh), (0, w_oc - ow), (0, 0)))
        r = r.reshape(m_total, Cout)
        r = jnp.pad(r, ((0, m_pad - m_total), (0, 0)))
        args.append(r)
        in_specs.append(pl.BlockSpec((tm, Cout), lambda m: (m, 0)))

    kern = functools.partial(_conv3x3_kernel, dys=dys, tm=tm, n_groups=s,
                             has_res=has_res, relu=relu)
    flops = 2 * m_pad * (3 * Cin) * Cout * 3
    bytes_accessed = int(sum(int(a.size) * a.dtype.itemsize for a in args)
                         + m_pad * Cout * 2)
    out = pl.pallas_call(
        kern,
        grid=(m_pad // tm,),
        in_specs=in_specs,
        out_specs=pl.BlockSpec((tm, Cout), lambda m: (m, 0)),
        out_shape=jax.ShapeDtypeStruct((m_pad, Cout), jnp.bfloat16),
        compiler_params=pltpu.CompilerParams(
            dimension_semantics=("parallel",), vmem_limit_bytes=VMEM_LIMIT),
        cost_estimate=pl.CostEstimate(flops=int(flops), transcendentals=0,
                                      bytes_accessed=bytes_accessed),
    )(*args)
    return out[:m_total].reshape(N, h_oc, w_oc, Cout)[:, :oh, :ow, :]


def conv1x1(x, w, bias, stride):
    N, H, W, Cin = x.shape
    Cout = w.shape[-1]
    xs = x[:, ::stride, ::stride, :]
    n, oh, ow, _ = xs.shape
    y = matmul_bias(xs.reshape(n * oh * ow, Cin), w, bias, relu=False)
    return y.reshape(n, oh, ow, Cout)


def conv7x7_stem(x, w, bias):
    """7x7/s2/p3 stem: im2col in XLA (runs once), K pre-padded 147->256, fused ReLU."""
    N, H, W, C = x.shape
    kh = kw = 7
    stride, pad = 2, 3
    oh = (H + 2 * pad - kh) // stride + 1
    ow = (W + 2 * pad - kw) // stride + 1
    xp = jnp.pad(x, ((0, 0), (pad, pad), (pad, pad), (0, 0)))
    cols = [xp[:, dy:dy + (oh - 1) * stride + 1:stride,
               dx:dx + (ow - 1) * stride + 1:stride, :]
            for dy in range(kh) for dx in range(kw)]
    patches = jnp.concatenate(cols, axis=-1).reshape(N * oh * ow, kh * kw * C)
    patches = jnp.pad(patches.astype(jnp.bfloat16),
                      ((0, 0), (0, w.shape[0] - kh * kw * C)))
    y = matmul_bias(patches, w, bias, relu=True, tm_max=512)
    return y.reshape(N, oh, ow, w.shape[1])


def maxpool_3x3_s2_p1(x):
    # Purely VPU/memory-bound -> chained jnp.maximum in XLA on bf16.
    N, H, W, C = x.shape
    xp = jnp.pad(x, ((0, 0), (1, 1), (1, 1), (0, 0)), constant_values=-jnp.inf)
    oh = (H - 1) // 2 + 1
    ow = (W - 1) // 2 + 1
    out = None
    for dy in range(3):
        for dx in range(3):
            win = xp[:, dy:dy + (oh - 1) * 2 + 1:2, dx:dx + (ow - 1) * 2 + 1:2, :]
            out = win if out is None else jnp.maximum(out, win)
    return out


# ---------------- adaptive avg-pool / bilinear as small matrices ------------

def adaptive_avg_matrix(in_size, out_size):
    m = np.zeros((out_size, in_size), np.float32)
    for i in range(out_size):
        s = (i * in_size) // out_size
        e = -((-(i + 1) * in_size) // out_size)   # ceil
        m[i, s:e] = 1.0 / (e - s)
    return jnp.asarray(m)


def bilinear_matrix(in_size, out_size):
    """align_corners=True interpolation matrix (out_size, in_size)."""
    m = np.zeros((out_size, in_size), np.float32)
    if in_size == 1 or out_size == 1:
        m[:, 0] = 1.0
    else:
        scale = (in_size - 1) / (out_size - 1)
        for o in range(out_size):
            src = o * scale
            lo = min(int(np.floor(src)), in_size - 1)
            hi = min(lo + 1, in_size - 1)
            t = src - lo
            m[o, lo] += 1.0 - t
            m[o, hi] += t
    return jnp.asarray(m)


# ------------------------------ parameters ----------------------------------

def init_params():
    # eval-mode BatchNorm2d with default stats (mean=0, var=1, gamma=1, beta=0)
    # folds to a single per-channel scale on the conv weights; bias stays zero.
    # TODO(synk): train-mode BatchNorm (per-batch statistics) is not reproduced.
    keys = iter(jax.random.split(jax.random.PRNGKey(0), 64))
    s_bn = 1.0 / np.sqrt(1.0 + EPS)

    def rnd(shape, scale=0.05):
        return jax.random.normal(next(keys), shape, jnp.float32) * scale

    def fold3x3(w):   # (3,3,Cin,Cout) -> (3, 3*Cin, Cout), BN scale folded, bf16
        kh, kw, cin, cout = w.shape
        return (w * s_bn).reshape(kh, kw * cin, cout).astype(jnp.bfloat16)

    def block_params(cin, cout, downsample):
        bp = {'w1': fold3x3(rnd((3, 3, cin, cout))),
              'b1': jnp.zeros((cout,), jnp.float32),
              'w2': fold3x3(rnd((3, 3, cout, cout))),
              'b2': jnp.zeros((cout,), jnp.float32)}
        if downsample:
            bp['wd'] = (rnd((1, 1, cin, cout)).reshape(cin, cout) * s_bn
                        ).astype(jnp.bfloat16)
            bp['bd'] = jnp.zeros((cout,), jnp.float32)
        return bp

    p = {}
    w7 = (rnd((7, 7, 3, 64)) * s_bn).reshape(147, 64)
    p['conv1_w'] = jnp.pad(w7, ((0, 256 - 147), (0, 0))).astype(jnp.bfloat16)
    p['conv1_b'] = jnp.zeros((64,), jnp.float32)
    p['layer1'] = [block_params(64, 64, False)]
    p['layer2'] = [block_params(64, 128, True)]
    p['layer3'] = [block_params(128, 256, True)]
    # PPM: four 1x1 convs (256 -> 512) folded into one (256, 2048) weight; the
    # column-concatenated bias lines up with the per-branch column blocks.
    p['ppm_w'] = jnp.concatenate([rnd((256, 512)) for _ in range(4)],
                                 axis=1).astype(jnp.bfloat16)
    p['ppm_b'] = jnp.concatenate([rnd((512,)) for _ in range(4)],
                                 axis=0).astype(jnp.float32)
    return p


# ------------------------------ model forward --------------------------------

def basic_block(x, bp, stride):
    if 'wd' in bp:
        identity = conv1x1(x, bp['wd'], bp['bd'], stride)
    else:
        identity = x
    out = conv3x3(x, bp['w1'], bp['b1'], stride, relu=True)
    out = conv3x3(out, bp['w2'], bp['b2'], 1, relu=True, residual=identity)
    return out


def ppm(x, w_blk, b_blk):
    N, H, W, C = x.shape
    xf = x.astype(jnp.float32)
    bins_list = (1, 2, 3, 6)
    pooled_rows, counts = [], []
    for bins in bins_list:
        ah = adaptive_avg_matrix(H, bins)
        aw = adaptive_avg_matrix(W, bins)
        pooled = jnp.einsum('oi,pj,nijc->nopc', ah, aw, xf)     # (N,bins,bins,C)
        pooled_rows.append(pooled.reshape(N * bins * bins, C))
        counts.append(N * bins * bins)
    rows = jnp.concatenate(pooled_rows, axis=0)                  # (sum_rows, C)
    y = matmul_bias(rows, w_blk, b_blk, relu=False).astype(jnp.float32)

    outs = [xf]
    r0 = 0
    for i, (bins, nrows) in enumerate(zip(bins_list, counts)):
        yb = y[r0:r0 + nrows, i * 512:(i + 1) * 512].reshape(N, bins, bins, 512)
        r0 += nrows
        uh = bilinear_matrix(bins, H)
        uw = bilinear_matrix(bins, W)
        outs.append(jnp.einsum('oi,pj,nijc->nopc', uh, uw, yb))  # (N,H,W,512)
    return jnp.concatenate(outs, axis=-1)


def stage2_forward(params, x_nchw):
    x = jnp.transpose(x_nchw, (0, 2, 3, 1)).astype(jnp.float32)  # NCHW -> NHWC
    x = conv7x7_stem(x, params['conv1_w'], params['conv1_b'])
    x = maxpool_3x3_s2_p1(x)
    for bp in params['layer1']:
        x = basic_block(x, bp, 1)
    for i, bp in enumerate(params['layer2']):
        x = basic_block(x, bp, 2 if i == 0 else 1)
    for i, bp in enumerate(params['layer3']):
        x = basic_block(x, bp, 2 if i == 0 else 1)
    x = ppm(x, params['ppm_w'], params['ppm_b'])
    return jnp.transpose(x, (0, 3, 1, 2))                        # NHWC -> NCHW


# ------------------------------------ main -----------------------------------

if __name__ == "__main__":
    # Numerical sanity check of the direct-conv kernel against lax.conv (bf16 tol).
    key = jax.random.PRNGKey(0)
    for stride in (1, 2):
        kx, kw, key = jax.random.split(key, 3)
        xt = jax.random.normal(kx, (1, 10, 10, 16), jnp.float32)
        wt = jax.random.normal(kw, (3, 3, 16, 32), jnp.float32) * 0.1
        ref = jax.lax.conv_general_dilated(
            xt.astype(jnp.bfloat16).astype(jnp.float32),
            wt.astype(jnp.bfloat16).astype(jnp.float32),
            window_strides=(stride, stride), padding=((1, 1), (1, 1)),
            dimension_numbers=('NHWC', 'HWIO', 'NHWC'))
        got = conv3x3(xt.astype(jnp.bfloat16),
                      wt.reshape(3, 48, 32).astype(jnp.bfloat16),
                      jnp.zeros((32,), jnp.float32), stride, relu=False)
        got = jax.block_until_ready(got).astype(jnp.float32)
        err = float(jnp.max(jnp.abs(got - ref)))
        scale = float(jnp.max(jnp.abs(ref))) + 1e-6
        assert err / scale < 0.06, ("conv3x3 mismatch", stride, err, scale)

    params = init_params()
    x = jax.random.normal(jax.random.PRNGKey(0), (2, 3, 64, 64), jnp.float32)
    out = jax.jit(stage2_forward)(params, x)
    out = jax.block_until_ready(out)
    assert out.shape == (2, 256 + 4 * 512, 4, 4), out.shape
    assert bool(jnp.all(jnp.isfinite(out)))
    print("KERNEL_OK")
</pallas_src>

<mosaic_0001>
module attributes {stable_mosaic.version = 11 : i64} {
  func.func @_conv3x3_kernel(%arg0: i32, %arg1: memref<224x48xbf16, #tpu.memory_space<vmem>>, %arg2: memref<3x48x32xbf16, #tpu.memory_space<vmem>>, %arg3: memref<1x32xf32, #tpu.memory_space<vmem>>, %arg4: memref<96x32xbf16, #tpu.memory_space<vmem>>) attributes {dimension_semantics = [#tpu.dimension_semantics<parallel>], iteration_bounds = array<i64: 2>, scalar_prefetch = 0 : i64, scratch_operands = 0 : i64, tpu.core_type = #tpu.core_type<tc>, window_params = [{pipeline_mode = #tpu.pipeline_mode<synchronous>, transform_indices = @transform_0, window_bounds = array<i64: 224, 48>}, {pipeline_mode = #tpu.pipeline_mode<synchronous>, transform_indices = @transform_1, window_bounds = array<i64: 3, 48, 32>}, {pipeline_mode = #tpu.pipeline_mode<synchronous>, transform_indices = @transform_2, window_bounds = array<i64: 1, 32>}, {transform_indices = @transform_3, window_bounds = array<i64: 96, 32>}]} {
    %c96_i32 = arith.constant 96 : i32
    %0 = arith.muli %arg0, %c96_i32 : i32
    %1 = tpu.assume_multiple %0, 96 : i32
    %c0_i32 = arith.constant 0 : i32
    %2 = arith.addi %1, %c0_i32 : i32
    %3 = tpu.assume_multiple %2, 8 : i32
    %4 = arith.index_cast %3 : i32 to index
    %c0 = arith.constant 0 : index
    %5 = vector.load %arg1[%4, %c0] : memref<224x48xbf16, #tpu.memory_space<vmem>>, vector<96x48xbf16>
    %c0_0 = arith.constant 0 : index
    %c0_1 = arith.constant 0 : index
    %c0_2 = arith.constant 0 : index
    %6 = vector.load %arg2[%c0_0, %c0_1, %c0_2] : memref<3x48x32xbf16, #tpu.memory_space<vmem>>, vector<1x48x32xbf16>
    %7 = vector.shape_cast %6 : vector<1x48x32xbf16> to vector<48x32xbf16>
    %cst = arith.constant dense<0.000000e+00> : vector<96x32xf32>
    %8 = tpu.matmul %5, %7, %cst {dimension_numbers = #tpu.dot_dimension_numbers<[1], [0], [0], [1], [0, 0, 1, 1], [], []>} : vector<96x48xbf16>, vector<48x32xbf16>, vector<96x32xf32> -> vector<96x32xf32>
    %c16_i32 = arith.constant 16 : i32
    %9 = arith.addi %1, %c16_i32 : i32
    %10 = tpu.assume_multiple %9, 8 : i32
    %11 = arith.index_cast %10 : i32 to index
    %c0_3 = arith.constant 0 : index
    %12 = vector.load %arg1[%11, %c0_3] : memref<224x48xbf16, #tpu.memory_space<vmem>>, vector<96x48xbf16>
    %c1 = arith.constant 1 : index
    %c0_4 = arith.constant 0 : index
    %c0_5 = arith.constant 0 : index
    %13 = vector.load %arg2[%c1, %c0_4, %c0_5] : memref<3x48x32xbf16, #tpu.memory_space<vmem>>, vector<1x48x32xbf16>
    %14 = vector.shape_cast %13 : vector<1x48x32xbf16> to vector<48x32xbf16>
    %cst_6 = arith.constant dense<0.000000e+00> : vector<96x32xf32>
    %15 = tpu.matmul %12, %14, %cst_6 {dimension_numbers = #tpu.dot_dimension_numbers<[1], [0], [0], [1], [0, 0, 1, 1], [], []>} : vector<96x48xbf16>, vector<48x32xbf16>, vector<96x32xf32> -> vector<96x32xf32>
    %16 = arith.addf %8, %15 : vector<96x32xf32>
    %c32_i32 = arith.constant 32 : i32
    %17 = arith.addi %1, %c32_i32 : i32
    %18 = tpu.assume_multiple %17, 8 : i32
    %19 = arith.index_cast %18 : i32 to index
    %c0_7 = arith.constant 0 : index
    %20 = vector.load %arg1[%19, %c0_7] : memref<224x48xbf16, #tpu.memory_space<vmem>>, vector<96x48xbf16>
    %c2 = arith.constant 2 : index
    %c0_8 = arith.constant 0 : index
    %c0_9 = arith.constant 0 : index
    %21 = vector.load %arg2[%c2, %c0_8, %c0_9] : memref<3x48x32xbf16, #tpu.memory_space<vmem>>, vector<1x48x32xbf16>
    %22 = vector.shape_cast %21 : vector<1x48x32xbf16> to vector<48x32xbf16>
    %cst_10 = arith.constant dense<0.000000e+00> : vector<96x32xf32>
    %23 = tpu.matmul %20, %22, %cst_10 {dimension_numbers = #tpu.dot_dimension_numbers<[1], [0], [0], [1], [0, 0, 1, 1], [], []>} : vector<96x48xbf16>, vector<48x32xbf16>, vector<96x32xf32> -> vector<96x32xf32>
    %24 = arith.addf %16, %23 : vector<96x32xf32>
    %c0_11 = arith.constant 0 : index
    %c0_12 = arith.constant 0 : index
    %25 = vector.load %arg3[%c0_11, %c0_12] : memref<1x32xf32, #tpu.memory_space<vmem>>, vector<1x32xf32>
    %26 = vector.broadcast %25 : vector<1x32xf32> to vector<96x32xf32>
    %27 = arith.addf %24, %26 : vector<96x32xf32>
    %28 = arith.truncf %27 : vector<96x32xf32> to vector<96x32xbf16>
    %c0_13 = arith.constant 0 : index
    %c0_14 = arith.constant 0 : index
    %29 = vector.load %arg4[%c0_13, %c0_14] : memref<96x32xbf16, #tpu.memory_space<vmem>>, vector<96x32xbf16>
    tpu.vector_store %arg4[%c0_13, %c0_14], %28 {strides = array<i32>} : memref<96x32xbf16, #tpu.memory_space<vmem>>, vector<96x32xbf16>,
    return
  }
  func.func @transform_0(%arg0: i32) -> (i32, i32) {
    %c0_i32 = arith.constant 0 : i32
    %c0_i32_0 = arith.constant 0 : i32
    %c0_i32_1 = arith.constant 0 : i32
    return %c0_i32, %c0_i32_0 : i32, i32
  }
  func.func @transform_1(%arg0: i32) -> (i32, i32, i32) {
    %c0_i32 = arith.constant 0 : i32
    %c0_i32_0 = arith.constant 0 : i32
    %c0_i32_1 = arith.constant 0 : i32
    %c0_i32_2 = arith.constant 0 : i32
    return %c0_i32, %c0_i32_0, %c0_i32_1 : i32, i32, i32
  }
  func.func @transform_2(%arg0: i32) -> (i32, i32) {
    %c0_i32 = arith.constant 0 : i32
    %c0_i32_0 = arith.constant 0 : i32
    %c0_i32_1 = arith.constant 0 : i32
    return %c0_i32, %c0_i32_0 : i32, i32
  }
  func.func @transform_3(%arg0: i32) -> (i32, i32) {
    %c0_i32 = arith.constant 0 : i32
    %c0_i32_0 = arith.constant 0 : i32
    return %arg0, %c0_i32 : i32, i32
  }
}

</mosaic_0001>

<bundles_post_ra>
// kernel: tpu_custom_call.1
= control target key start
LH: loop header
LB: loop body
LE: loop exit
PB: predicated region body
PF: predicated region fallthrough
CT: control target
= control target key end

     0   :  { %s1074_s12 = smov 0   ;;  %s1196_s0 = inlined_call_operand.vmem [shape: bf16[224,48], index: 0, kind: input, shape index: {}]   ;;  %s1197_s1 = inlined_call_operand.vmem [shape: bf16[3,48,32], index: 1, kind: input, shape index: {}]   ;;  %s1198_s2 = inlined_call_operand.vmem [shape: f32[1,32], index: 2, kind: input, shape index: {}]   ;;  %s1199_s3 = inlined_call_operand.vmem [shape: bf16[192,32], index: 3, kind: output, shape index: {}]  }
   0x1 LB: > { %s808_s13 = sadd.s32 4294967295, %s1052_s12   ;;  %p811_p0 = scmp.ge.s32.totalorder %s1052_s12, 1  ;;  %s1052_s12 = sphi %s1074_s12, %s13_s12  }
   0x2   : > { %p127_p1 = scmp.lt.s32.totalorder %s1052_s12, 3 }
   0x4   : > { %p128_p2 = pnand %p811_p0, %p127_p1 }
   0x5   : > { %v1019_v0 = vld [vmem:[%s1197_s1 + $0x18] sm:$0xff] (!%p128_p2)   ;;  %s1087_s16 = smul.u32 (!%p128_p2), 96, %s808_s13  ;;  %v1020_v1 = vld [vmem:[%s1197_s1] sm:$0xff] (!%p128_p2)   ;;  %vm248_vm0 = vcmask (!%p128_p2), 392192   ;;  %v1022_v3 = vld [vmem:[%s1197_s1 + $0x8] sm:$0xff] (!%p128_p2)   ;;  %vm745_vm1 = vcmask (!%p128_p2), 257024  }
   0x6   : > { %131 = sbr.rel (%p128_p2) target bundleno = 272 (0x110), region = 32  ;;  %927 = vmatprep.subr.bf16.mxu1 (!%p128_p2), %v1019_v0  ;;  %v1021_v2 = vld [vmem:[%s1197_s1 + $0x20] sm:$0xff] (!%p128_p2)   ;;  %945 = vmatprep.subr.bf16.mxu0 (!%p128_p2), %v1020_v1  ;;  %v1023_v4 = vld [vmem:[%s1197_s1 + $0x28] sm:$0xff] (!%p128_p2)   ;;  %v1024_v5 = vld [vmem:[%s1197_s1 + $0x10] sm:$0xff] (!%p128_p2)  }
   0x7   : > { %s176_s21 = sadd.s32 (!%p128_p2), 16, %s1087_s16  ;;  %928 = vmatpush3.bf16.msra.mxu1 (!%p128_p2), %v1019_v0  ;;  %946 = vmatpush3.bf16.msra.mxu0 (!%p128_p2), %v1020_v1  ;;  %s154_s6 = sshra.s32 (!%p128_p2), %s1087_s16, 3  ;;  %v1029_v10 = vld [vmem:[%s1197_s1 + $0x30] sm:$0xff] (!%p128_p2)   ;;  %v1030_v11 = vld [vmem:[%s1197_s1 + $0x38] sm:$0xff] (!%p128_p2)   ;;  %v1035_v15 = vld [vmem:[%s1197_s1 + $0x40] sm:$0xff] (!%p128_p2)  }
   0x8   : > { %s177_s24 = sshra.s32 (!%p128_p2), %s176_s21, 3  ;;  %929 = vmatprep.subr.bf16.mxu1 (!%p128_p2), %v1021_v2  ;;  %947 = vmatprep.subr.bf16.mxu0 (!%p128_p2), %v1022_v3  ;;  %s813_s7 = sshll.u32 (!%p128_p2), %s154_s6, 2  ;;  %v873_v36 = vld [vmem:[%s1198_s2] ss:$0 sm:$0xff] (!%p128_p2) }
   0x9   : > { %s814_s27 = sshll.u32 (!%p128_p2), %s177_s24, 2  ;;  %s1115_s10 = scalar_lea.vmem (!%p128_p2), %s1196_s0, %s813_s7 }
   0xa   : > { %s1108_s5 = scalar_lea.vmem (!%p128_p2), %s1196_s0, %s814_s27  ;;  %v1026_v7 = vld [vmem:[%s1115_s10] sm:$0xff] (!%p128_p2)   ;;  %s495_s11 = sadd.s32 (!%p128_p2), 32, %s1087_s16  ;;  %v1028_v9 = vld [vmem:[%s1115_s10 + $0x8] sm:$0xff] (!%p128_p2)   ;;  %v1032_v13 = vld [vmem:[%s1115_s10 + $0x10] sm:$0xff] (!%p128_p2)  }
   0xb   : > { %v1025_v6 = vld [vmem:[%s1108_s5] sm:$0xff] (!%p128_p2)   ;;  %930 = vmatpush3.bf16.msra.mxu1 (!%p128_p2), %v1021_v2  ;;  %948 = vmatpush3.bf16.msra.mxu0 (!%p128_p2), %v1022_v3  ;;  %v1027_v8 = vld [vmem:[%s1108_s5 + $0x8] sm:$0xff] (!%p128_p2)   ;;  %s496_s19 = sshra.s32 (!%p128_p2), %s495_s11, 3  ;;  %v1031_v12 = vld [vmem:[%s1108_s5 + $0x10] sm:$0xff] (!%p128_p2)   ;;  %s146_s25 = smul.u32 (!%p128_p2), 12, %s808_s13 }
   0xc   : > { %931 = vmatprep.subr.bf16.mxu1 (!%p128_p2), %v1023_v4  ;;  %949 = vmatprep.subr.bf16.mxu0 (!%p128_p2), %v1024_v5  ;;  %s851_s16 = sshll.u32 (!%p128_p2), %s496_s19, 2  ;;  %v1033_v14 = vld [vmem:[%s1108_s5 + $0x18] sm:$0xff] (!%p128_p2)   ;;  %v1036_v17 = vld [vmem:[%s1108_s5 + $0x20] sm:$0xff] (!%p128_p2)   ;;  %v1038_v19 = vld [vmem:[%s1108_s5 + $0x28] sm:$0xff] (!%p128_p2)  }
   0xd   : > { %933 = vmatprep.mubr.msk.bf16.mxu1 %vm248_vm0, %v1025_v6  ;;  %951 = vmatprep.mubr.msk.bf16.mxu0 %vm248_vm0, %v1026_v7  ;;  %s499_s24 = scalar_lea.vmem %s1196_s0, %s851_s16  ;;  %v1034_v16 = vld [vmem:[%s1115_s10 + $0x18] sm:$0xff]   ;;  %v1042_v21 = vld [vmem:[%s1115_s10 + $0x20] sm:$0xff]   ;;  %v1043_v25 = vld [vmem:[%s1115_s10 + $0x28] sm:$0xff]   ;;  %p147_p3 = scmp.lt.s32.totalorder %s146_s25, 23 }
   0xe   : > { %v1037_v18 = vld [vmem:[%s499_s24] sm:$0xff]   ;;  %v1039_v20 = vld [vmem:[%s499_s24 + $0x8] sm:$0xff]   ;;  %v1040_v22 = vld [vmem:[%s499_s24 + $0x10] sm:$0xff]  }
   0xf   : > { %932 = vmatpush3.bf16.msra.mxu1 %v1023_v4  ;;  %950 = vmatpush3.bf16.msra.mxu0 %v1024_v5  ;;  %v1041_v23 = vld [vmem:[%s499_s24 + $0x18] sm:$0xff]   ;;  %v1044_v24 = vld [vmem:[%s499_s24 + $0x20] sm:$0xff]   ;;  %v1045_v26 = vld [vmem:[%s499_s24 + $0x28] sm:$0xff]   ;;  %s1201_s25 = smov (!%p147_p3, %s146_s25), 23 }
  0x10   : > { %981 = vmatprep.subr.bf16.mxu1 %v1020_v1  ;;  %963 = vmatprep.subr.bf16.mxu0 %v1029_v10  ;;  %s812_s28 = sshll.u32 %s1201_s25, 2 }
  0x11   : > { %s1167_s30 = scalar_lea.vmem %s1199_s3, %s812_s28 }
  0x12   : > { %934 = vmatmul.mubr.msk.bf16.vlgmr.msra.gmra.mrb[0].mxu1 %vm248_vm0, %v1027_v8  ;;  %952 = vmatmul.mubr.msk.bf16.vlgmr.msra.gmra.mrb[0].mxu0 %vm248_vm0, %v1028_v9 }
  0x13   : > { %984 = vmatpush3.bf16.msra.mxu1 %v1020_v1  ;;  %964 = vmatpush3.bf16.msra.mxu0 %v1029_v10 }
  0x14   : > { %937 = vmatprep.mubr.msk.bf16.mxu1 %vm248_vm0, %v1031_v12  ;;  %965 = vmatprep.subr.bf16.mxu0 %v1030_v11 }
  0x15   : > { %955 = vmatprep.mubr.msk.bf16.mxu0 %vm248_vm0, %v1032_v13  ;;  %982 = vmatprep.subr.bf16.mxu1 %v1022_v3 }
  0x17   : > { %985 = vmatpush3.bf16.msra.mxu1 %v1022_v3  ;;  %966 = vmatpush3.bf16.msra.mxu0 %v1030_v11 }
  0x18   : > { %983 = vmatprep.subr.bf16.mxu1 %v1024_v5  ;;  %967 = vmatprep.subr.bf16.mxu0 %v1035_v15 }
  0x1a   : > { %938 = vmatmul.mubr.msk.bf16.gmra.mrb[4].mxu1 %vm248_vm0, %v1033_v14  ;;  %956 = vmatmul.mubr.msk.bf16.gmra.mrb[4].mxu0 %vm248_vm0, %v1034_v16 }
  0x1b   : > { %941 = vmatprep.mubr.msk.bf16.mxu1 %vm248_vm0, %v1036_v17  ;;  %968 = vmatpush3.bf16.msra.mxu0 %v1035_v15 }
  0x1c   : > { %969 = vmatprep.mubr.msk.bf16.mxu0 %vm248_vm0, %v1037_v18  ;;  %986 = vmatpush3.bf16.msra.mxu1 %v1024_v5 }
  0x22   : > { %942 = vmatmul.mubr.msk.bf16.gmra.mrb[8].mxu1 %vm248_vm0, %v1038_v19  ;;  %970 = vmatmul.mubr.msk.bf16.vlgmr.msra.gmra.mrb[0].mxu0 %vm248_vm0, %v1039_v20 }
  0x23   : > { %959 = vmatprep.mubr.msk.bf16.mxu1 %vm248_vm0, %v1042_v21  ;;  %973 = vmatprep.mubr.msk.bf16.mxu0 %vm248_vm0, %v1040_v22 }
  0x2a   : > { %974 = vmatmul.mubr.msk.bf16.gmra.mrb[4].mxu0 %vm248_vm0, %v1041_v23 }
  0x2b   : > { %977 = vmatprep.mubr.msk.bf16.mxu0 %vm248_vm0, %v1044_v24 }
  0x2e   : > { %960 = vmatmul.mubr.msk.bf16.vlgmr.msra.gmra.mrb[8].mxu1 %vm248_vm0, %v1043_v25 }
  0x32   : > { %978 = vmatmul.mubr.msk.bf16.gmra.mrb[8].mxu0 %vm248_vm0, %v1045_v26 }
  0xe5   : > { %v935_v27 = vpop.f32.mrb[0].mxu1 }
  0xe6   : > { %v301_v28 = vpop.f32.mrb[1].mxu1 }
  0xe7   : > { %v936_v29 = vpop.f32.mrb[2].mxu1 }
  0xe8   : > { %v304_v30 = vpop.f32.mrb[3].mxu1 }
  0xed   : > { %v939_v31 = vpop.f32.mrb[4].mxu1 }
  0xee   : > { %v317_v32 = vpop.f32.mrb[5].mxu1 }
  0xef   : > { %v940_v33 = vpop.f32.mrb[6].mxu1 }
  0xf0   : > { %v320_v34 = vpop.f32.mrb[7].mxu1 }
  0xf5   : > { %v971_v35 = vpop.f32.mrb[0].mxu0 }
  0xf6   : > { %v987_v37 = vadd.f32 %v971_v35, %v935_v27  ;;  %v619_v38 = vpop.f32.mrb[1].mxu0 }
  0xf7   : > { %v988_v39 = vadd.f32 %v619_v38, %v301_v28  ;;  %v972_v40 = vpop.f32.mrb[2].mxu0 }
  0xf8   : > { %v687_v41 = vadd.f32 %v987_v37, %v873_v36  ;;  %v989_v42 = vadd.f32 %v972_v40, %v936_v29  ;;  %v622_v43 = vpop.f32.mrb[3].mxu0 }
  0xf9   : > { %v685_v44 = vadd.f32 %v988_v39, %v873_v36  ;;  %v990_v45 = vadd.f32 %v622_v43, %v304_v30 }
  0xfa   : > { %v890_v46 = vpack.c.bf16 %v687_v41, %v687_v41  ;;  %v688_v47 = vadd.f32 %v989_v42, %v873_v36 }
  0xfb   : > { %v888_v48 = vpack.c.bf16 %v685_v44, %v685_v44  ;;  %v686_v49 = vadd.f32 %v990_v45, %v873_v36 }
  0xfc   : > { %748 = vst.msk [vmem:[%s1167_s30 + $0x8] sm:$0xf] %vm745_vm1, %v890_v46  ;;  %v891_v50 = vpack.c.bf16 %v688_v47, %v688_v47 }
  0xfd   : > { %746 = vst.msk [vmem:[%s1167_s30] sm:$0xf] %vm745_vm1, %v888_v48  ;;  %v889_v51 = vpack.c.bf16 %v686_v49, %v686_v49  ;;  %v975_v52 = vpop.f32.mrb[4].mxu0 }
  0xfe   : > { %749 = vst.msk [vmem:[%s1167_s30 + $0xc] sm:$0xf] %vm745_vm1, %v891_v50  ;;  %v991_v53 = vadd.f32 %v975_v52, %v939_v31  ;;  %v635_v54 = vpop.f32.mrb[5].mxu0 }
  0xff   : > { %747 = vst.msk [vmem:[%s1167_s30 + $0x4] sm:$0xf] %vm745_vm1, %v889_v51  ;;  %v992_v55 = vadd.f32 %v635_v54, %v317_v32  ;;  %v976_v56 = vpop.f32.mrb[6].mxu0 }
 0x100   : > { %v691_v57 = vadd.f32 %v991_v53, %v873_v36  ;;  %v993_v58 = vadd.f32 %v976_v56, %v940_v33  ;;  %v638_v59 = vpop.f32.mrb[7].mxu0 }
 0x101   : > { %v961_v60 = vpop.f32.mrb[8].mxu1  ;;  %v689_v61 = vadd.f32 %v992_v55, %v873_v36  ;;  %v994_v62 = vadd.f32 %v638_v59, %v320_v34 }
 0x102   : > { %v480_v63 = vpop.f32.mrb[9].mxu1  ;;  %v894_v0 = vpack.c.bf16 %v691_v57, %v691_v57  ;;  %v692_v1 = vadd.f32 %v993_v58, %v873_v36 }
 0x103   : > { %v962_v2 = vpop.f32.mrb[10].mxu1  ;;  %v892_v3 = vpack.c.bf16 %v689_v61, %v689_v61  ;;  %v690_v4 = vadd.f32 %v994_v62, %v873_v36 }
 0x104   : > { %v483_v5 = vpop.f32.mrb[11].mxu1  ;;  %752 = vst.msk [vmem:[%s1167_s30 + $0x18] sm:$0xf] %vm745_vm1, %v894_v0  ;;  %v895_v6 = vpack.c.bf16 %v692_v1, %v692_v1 }
 0x105   : > { %750 = vst.msk [vmem:[%s1167_s30 + $0x10] sm:$0xf] %vm745_vm1, %v892_v3  ;;  %v893_v7 = vpack.c.bf16 %v690_v4, %v690_v4  ;;  %v979_v8 = vpop.f32.mrb[8].mxu0 }
 0x106   : > { %753 = vst.msk [vmem:[%s1167_s30 + $0x1c] sm:$0xf] %vm745_vm1, %v895_v6  ;;  %v995_v9 = vadd.f32 %v979_v8, %v961_v60  ;;  %v651_v10 = vpop.f32.mrb[9].mxu0 }
 0x107   : > { %751 = vst.msk [vmem:[%s1167_s30 + $0x14] sm:$0xf] %vm745_vm1, %v893_v7  ;;  %v996_v11 = vadd.f32 %v651_v10, %v480_v63  ;;  %v980_v12 = vpop.f32.mrb[10].mxu0 }
 0x108   : > { %v695_v13 = vadd.f32 %v995_v9, %v873_v36  ;;  %v997_v14 = vadd.f32 %v980_v12, %v962_v2  ;;  %v654_v15 = vpop.f32.mrb[11].mxu0 }
 0x109   : > { %v693_v16 = vadd.f32 %v996_v11, %v873_v36  ;;  %v998_v17 = vadd.f32 %v654_v15, %v483_v5 }
 0x10a   : > { %v898_v18 = vpack.c.bf16 %v695_v13, %v695_v13  ;;  %v696_v19 = vadd.f32 %v997_v14, %v873_v36 }
 0x10b   : > { %v896_v20 = vpack.c.bf16 %v693_v16, %v693_v16  ;;  %v694_v21 = vadd.f32 %v998_v17, %v873_v36 }
 0x10c   : > { %756 = vst.msk [vmem:[%s1167_s30 + $0x28] sm:$0xf] %vm745_vm1, %v898_v18  ;;  %v899_v22 = vpack.c.bf16 %v696_v19, %v696_v19 }
 0x10d   : > { %754 = vst.msk [vmem:[%s1167_s30 + $0x20] sm:$0xf] %vm745_vm1, %v896_v20  ;;  %v897_v23 = vpack.c.bf16 %v694_v21, %v694_v21 }
 0x10e   : > { %757 = vst.msk [vmem:[%s1167_s30 + $0x2c] sm:$0xf] %vm745_vm1, %v899_v22 }
 0x10f   : > { %755 = vst.msk [vmem:[%s1167_s30 + $0x24] sm:$0xf] %vm745_vm1, %v897_v23 }
 0x110 PF: > { %s13_s12 = sadd.s32 1, %s1052_s12  }
 0x111   : > { %p10_p4 = scmp.ge.s32.totalorder %s13_s12, 4  }
 0x113   :  { %12 = sbr.rel (!%p10_p4) target bundleno = 1 (0x1), region = 64 }

</bundles_post_ra>
